<compile_context>
chip_gen: v7x
topology: tpu7x:2x2x1
jax: 0.10.0
libtpu: 0.0.40
codegen_flags: <defaults>
</compile_context>

<pallas_src>
import functools

import jax
import jax.numpy as jnp
from jax.experimental import pallas as pl
from jax.experimental.pallas import tpu as pltpu


def _round_up(x, m):
    return ((x + m - 1) // m) * m


# --------------------- tiled matmul + bias (parallel) -------------------------
def matmul_bias_kernel(x_ref, w_ref, b_ref, o_ref):
    o_ref[...] = (jnp.dot(x_ref[...], w_ref[...],
                          preferred_element_type=jnp.float32)
                  + b_ref[...]).astype(o_ref.dtype)


def matmul_bias(x2d, w_t, b, out_dtype, tm_pref=1024, tn_pref=512):
    """x2d: (M, K), w_t: (K, N), b: (1, N) f32 -> (M, N) out_dtype.

    K is kept whole (K = E or H, small). M and N are padded up to the tile
    sizes (tail masked by slicing the output), so we never fall back to a
    full-dim block. Both grid axes are 'parallel' -> megacore-sharded on v7x.
    Grid order is chosen so the larger operand is streamed from HBM only once.
    """
    M, K = x2d.shape
    N = w_t.shape[-1]

    tm = min(tm_pref, _round_up(M, 8))       # sublane-aligned
    tn = min(tn_pref, _round_up(N, 128))     # lane-aligned
    Mp = _round_up(M, tm)
    Np = _round_up(N, tn)
    if Mp != M:
        x2d = jnp.pad(x2d, ((0, Mp - M), (0, 0)))
    if Np != N:
        w_t = jnp.pad(w_t, ((0, 0), (0, Np - N)))
        b = jnp.pad(b, ((0, 0), (0, Np - N)))

    gm, gn = Mp // tm, Np // tn
    x_bytes = Mp * K * jnp.dtype(x2d.dtype).itemsize
    w_bytes = K * Np * jnp.dtype(w_t.dtype).itemsize

    # Inner-axis operand gets re-streamed (outer-extent) times; keep the LARGE
    # operand constant along the inner axis.
    n_inner = (w_bytes * gm + x_bytes) <= (x_bytes * gn + w_bytes)
    if n_inner:       # N-axis innermost: x streamed once, W streamed gm times
        grid = (gm, gn)
        x_spec = pl.BlockSpec((tm, K), lambda i, j: (i, 0))
        w_spec = pl.BlockSpec((K, tn), lambda i, j: (0, j))
        b_spec = pl.BlockSpec((1, tn), lambda i, j: (0, j))
        o_spec = pl.BlockSpec((tm, tn), lambda i, j: (i, j))
    else:             # M-axis innermost: W streamed once, x streamed gn times
        grid = (gn, gm)
        x_spec = pl.BlockSpec((tm, K), lambda j, i: (i, 0))
        w_spec = pl.BlockSpec((K, tn), lambda j, i: (0, j))
        b_spec = pl.BlockSpec((1, tn), lambda j, i: (0, j))
        o_spec = pl.BlockSpec((tm, tn), lambda j, i: (i, j))

    vmem_need = 2 * (tm * K * jnp.dtype(x2d.dtype).itemsize
                     + K * tn * jnp.dtype(w_t.dtype).itemsize
                     + tn * 4
                     + tm * tn * jnp.dtype(out_dtype).itemsize)
    vmem_limit = int(min(64 << 20, max(vmem_need + (4 << 20), 24 << 20)))

    out = pl.pallas_call(
        matmul_bias_kernel,
        out_shape=jax.ShapeDtypeStruct((Mp, Np), out_dtype),
        grid_spec=pltpu.PrefetchScalarGridSpec(
            num_scalar_prefetch=0,
            grid=grid,
            in_specs=[x_spec, w_spec, b_spec],
            out_specs=o_spec,
        ),
        compiler_params=pltpu.CompilerParams(
            dimension_semantics=("parallel", "parallel"),
            vmem_limit_bytes=vmem_limit),
    )(x2d, w_t, b)

    if Mp != M or Np != N:
        out = out[:M, :N]
    return out


# ----------------------- GRU recurrence (serial part) -------------------------
def gru_recurrence_kernel(gx_ref, whh_ref, bhhn_ref, out_ref, h_scr, *,
                          tt, hidden):
    """One GRU layer recurrence over a chunk of `tt` timesteps, one batch block.

    gx_ref:  (tt, Bb, 3H)  precomputed x@W_ih^T + b_ih + [b_hh_r, b_hh_z, 0]
    whh_ref: (H, 3H)       recurrent weights (compute dtype)
    bhhn_ref:(1, H)        b_hh for the n gate (f32)
    out_ref: (tt, Bb, H)
    h_scr:   (Bb, H) f32   hidden state, persists across time-chunk grid steps
    """
    t_chunk = pl.program_id(1)          # inner (time) axis
    H = hidden
    Bb = h_scr.shape[0]

    @pl.when(t_chunk == 0)
    def _():
        h_scr[...] = jnp.zeros_like(h_scr)

    whh = whh_ref[...]
    # Hoisted out of the unrolled loop: JAX does not CSE broadcast_in_dim.
    bhh_n = jnp.broadcast_to(bhhn_ref[...], (Bb, H))

    def step(t, h):
        gx = gx_ref[t].astype(jnp.float32)                       # (Bb, 3H)
        # NOTE: at small Bb this matmul fills only Bb MXU rows -> the chunk is
        # latency-bound; we optimize for fewer grid steps (TT) + batch split,
        # not per-step micro-ops.
        gh = jnp.dot(h.astype(whh.dtype), whh,
                     preferred_element_type=jnp.float32)         # (Bb, 3H)
        r = jax.nn.sigmoid(gx[:, 0:H] + gh[:, 0:H])
        z = jax.nn.sigmoid(gx[:, H:2 * H] + gh[:, H:2 * H])
        n = jnp.tanh(gx[:, 2 * H:3 * H] + r * (gh[:, 2 * H:3 * H] + bhh_n))
        h_new = (1.0 - z) * n + z * h
        out_ref[t] = h_new.astype(out_ref.dtype)
        return h_new

    # Partial unroll for larger TT to avoid vreg spills from (Bb,3H) f32 temps.
    unroll = tt if tt <= 8 else 4
    h_final = jax.lax.fori_loop(0, tt, step, h_scr[...], unroll=unroll)
    h_scr[...] = h_final


def _pick_tt(T, Bb, H, act_itemsize, w_itemsize, pref, budget):
    """Largest divisor of T (<= pref) whose double-buffered working set fits."""
    fixed = 2 * (H * 3 * H * w_itemsize) + 2 * (H * 4) + Bb * H * 4
    best = 1
    for c in range(1, min(pref, T) + 1):
        if T % c:
            continue
        var = 2 * c * Bb * 3 * H * act_itemsize + 2 * c * Bb * H * act_itemsize
        if fixed + var <= budget:
            best = c
    return best


def gru_recurrence(gx_tb3h, w_hh_t, b_hh_n, *, hidden, out_dtype, tt_pref=16,
                   vmem_budget=20 << 20):
    """gx_tb3h: (T, B, 3H) time-major. Returns (T, B, H)."""
    T, B, G = gx_tb3h.shape
    H = hidden

    # Batch split across a leading 'parallel' grid axis (-> both TCs on v7x).
    # Only when each half still satisfies the sublane constraint (multiple of 8).
    nb = 2 if (B % 16 == 0) else 1
    Bb = B // nb

    act_isz = jnp.dtype(gx_tb3h.dtype).itemsize
    w_isz = jnp.dtype(w_hh_t.dtype).itemsize
    TT = _pick_tt(T, Bb, H, act_isz, w_isz, tt_pref, vmem_budget)

    vmem_need = (2 * TT * Bb * G * act_isz
                 + 2 * TT * Bb * H * jnp.dtype(out_dtype).itemsize
                 + 2 * H * G * w_isz + 2 * H * 4 + Bb * H * 4)
    vmem_limit = int(min(64 << 20, max(vmem_need + (4 << 20), 24 << 20)))

    kernel = functools.partial(gru_recurrence_kernel, tt=TT, hidden=H)
    return pl.pallas_call(
        kernel,
        out_shape=jax.ShapeDtypeStruct((T, B, H), out_dtype),
        grid_spec=pltpu.PrefetchScalarGridSpec(
            num_scalar_prefetch=0,
            grid=(nb, T // TT),
            in_specs=[
                pl.BlockSpec((TT, Bb, G), lambda b, c: (c, b, 0)),   # gx chunk
                pl.BlockSpec((H, G), lambda b, c: (0, 0)),           # W_hh^T
                pl.BlockSpec((1, H), lambda b, c: (0, 0)),           # b_hh (n)
            ],
            out_specs=pl.BlockSpec((TT, Bb, H), lambda b, c: (c, b, 0)),
            scratch_shapes=[pltpu.VMEM((Bb, H), jnp.float32)],
        ),
        compiler_params=pltpu.CompilerParams(
            dimension_semantics=("parallel", "arbitrary"),  # batch || , time seq
            vmem_limit_bytes=vmem_limit),
    )(gx_tb3h, w_hh_t, b_hh_n)


# ------------------------------- Full model ----------------------------------
def init_params(key, words_num, embedding_dim, hidden_size, num_layers):
    ks = jax.random.split(key, 2 + 4 * num_layers + 2)
    params = {}
    params["embedding"] = jax.random.normal(ks[0], (words_num, embedding_dim),
                                            jnp.float32)
    bound = 1.0 / jnp.sqrt(hidden_size)
    params["gru"] = []
    for layer in range(num_layers):
        in_dim = embedding_dim if layer == 0 else hidden_size
        k0, k1, k2, k3 = ks[2 + 4 * layer: 6 + 4 * layer]
        w_ih = jax.random.uniform(k0, (3 * hidden_size, in_dim), jnp.float32,
                                  -bound, bound)
        w_hh = jax.random.uniform(k1, (3 * hidden_size, hidden_size),
                                  jnp.float32, -bound, bound)
        b_ih = jax.random.uniform(k2, (3 * hidden_size,), jnp.float32,
                                  -bound, bound)
        b_hh = jax.random.uniform(k3, (3 * hidden_size,), jnp.float32,
                                  -bound, bound)
        params["gru"].append((w_ih, w_hh, b_ih, b_hh))
    lb = 1.0 / jnp.sqrt(hidden_size)
    params["linear_w"] = jax.random.uniform(ks[-2], (words_num, hidden_size),
                                            jnp.float32, -lb, lb)
    params["linear_b"] = jax.random.uniform(ks[-1], (words_num,), jnp.float32,
                                            -lb, lb)
    return params


def prepare_params(params, compute_dtype=jnp.bfloat16):
    """One-time weight transpose / cast / bias fold, hoisted out of the forward."""
    H = params["gru"][0][1].shape[-1]
    prepared = {"embedding": params["embedding"], "gru": []}
    for (w_ih, w_hh, b_ih, b_hh) in params["gru"]:
        # Fold b_ih and the r/z parts of b_hh into the hoisted projection bias;
        # only b_hh_n must stay inside the recurrence (r multiplies it).
        bias_comb = (b_ih + jnp.concatenate(
            [b_hh[:2 * H], jnp.zeros((H,), b_hh.dtype)])).reshape(1, 3 * H)
        prepared["gru"].append(dict(
            w_ih_t=jnp.asarray(w_ih.T, compute_dtype),
            w_hh_t=jnp.asarray(w_hh.T, compute_dtype),
            bias=bias_comb.astype(jnp.float32),
            b_hh_n=b_hh[2 * H:].reshape(1, H).astype(jnp.float32),
        ))
    prepared["linear_w_t"] = jnp.asarray(params["linear_w"].T, compute_dtype)
    prepared["linear_b"] = params["linear_b"].reshape(1, -1).astype(jnp.float32)
    return prepared


@jax.jit
def vanilla_gru_forward(prepared, tokens):
    """tokens: int32 (B, T). Returns logits (B, T, words_num) in f32."""
    B, T = tokens.shape
    H = prepared["gru"][0]["w_hh_t"].shape[0]
    cdt = prepared["gru"][0]["w_ih_t"].dtype

    x = jnp.take(prepared["embedding"], tokens, axis=0)   # (B, T, E) gather glue
    x = jnp.transpose(x, (1, 0, 2))                       # time-major (T, B, E)

    for layer in prepared["gru"]:
        in_dim = layer["w_ih_t"].shape[0]
        # Parallel, MXU-friendly input projection over all T*B rows.
        gx = matmul_bias(x.reshape(T * B, in_dim).astype(cdt),
                         layer["w_ih_t"], layer["bias"], out_dtype=cdt)
        gx = gx.reshape(T, B, 3 * H)
        # Serial recurrence: only h @ W_hh^T remains per timestep.
        x = gru_recurrence(gx, layer["w_hh_t"], layer["b_hh_n"],
                           hidden=H, out_dtype=cdt)

    # Transpose the SMALL (T,B,H) activation so the large f32 logits are
    # produced directly in (B,T,V) layout (no full-logits transpose at the end).
    xb = jnp.transpose(x, (1, 0, 2)).reshape(B * T, H).astype(
        prepared["linear_w_t"].dtype)
    logits = matmul_bias(xb, prepared["linear_w_t"], prepared["linear_b"],
                         out_dtype=jnp.float32)
    V = prepared["linear_w_t"].shape[-1]
    return logits.reshape(B, T, V)


# ------------------------ pure-JAX reference (check) --------------------------
def gru_ref(x_bte, layers, H):
    x = x_bte
    for (w_ih, w_hh, b_ih, b_hh) in layers:
        B = x.shape[0]
        h0 = jnp.zeros((B, H), jnp.float32)

        def step(h, x_t):
            gx = x_t @ w_ih.T + b_ih
            gh = h @ w_hh.T + b_hh
            r = jax.nn.sigmoid(gx[:, 0:H] + gh[:, 0:H])
            z = jax.nn.sigmoid(gx[:, H:2 * H] + gh[:, H:2 * H])
            n = jnp.tanh(gx[:, 2 * H:3 * H] + r * gh[:, 2 * H:3 * H])
            h_new = (1.0 - z) * n + z * h
            return h_new, h_new

        _, ys = jax.lax.scan(step, h0, jnp.transpose(x, (1, 0, 2)))
        x = jnp.transpose(ys, (1, 0, 2))
    return x


def forward_ref(params, tokens):
    x = jnp.take(params["embedding"], tokens, axis=0)
    H = params["gru"][0][1].shape[-1]
    x = gru_ref(x, params["gru"], H)
    return x @ params["linear_w"].T + params["linear_b"]


if __name__ == "__main__":
    words_num, embedding_dim, hidden_size, num_layers = 64, 32, 32, 2
    B, T = 2, 8

    key = jax.random.PRNGKey(0)
    pkey, dkey = jax.random.split(key)
    params = init_params(pkey, words_num, embedding_dim, hidden_size, num_layers)
    tokens = jax.random.randint(dkey, (B, T), 0, words_num, dtype=jnp.int32)

    ref = forward_ref(params, tokens)

    # Strict check in f32 compute mode (mathematically identical to reference).
    prep_f32 = prepare_params(params, compute_dtype=jnp.float32)
    out_f32 = jax.block_until_ready(vanilla_gru_forward(prep_f32, tokens))
    assert out_f32.shape == (B, T, words_num), out_f32.shape
    assert jnp.allclose(out_f32, ref, atol=5e-4, rtol=5e-4), \
        float(jnp.max(jnp.abs(out_f32 - ref)))

    # bf16-MXU mode (production path per perf review): looser tolerance.
    # TODO(synk): re-validate bf16 hidden-state drift at production seq lengths.
    prep_bf16 = prepare_params(params, compute_dtype=jnp.bfloat16)
    out_bf16 = jax.block_until_ready(vanilla_gru_forward(prep_bf16, tokens))
    assert out_bf16.shape == (B, T, words_num), out_bf16.shape
    assert jnp.allclose(out_bf16, ref, atol=1e-1, rtol=1e-1), \
        float(jnp.max(jnp.abs(out_bf16 - ref)))

    print("KERNEL_OK")
</pallas_src>

<mosaic_0001>
module attributes {stable_mosaic.version = 11 : i64} {
  func.func @matmul_bias_kernel(%arg0: i32, %arg1: i32, %arg2: memref<16x32xf32, #tpu.memory_space<vmem>>, %arg3: memref<32x128xf32, #tpu.memory_space<vmem>>, %arg4: memref<1x128xf32, #tpu.memory_space<vmem>>, %arg5: memref<16x128xf32, #tpu.memory_space<vmem>>) attributes {dimension_semantics = [#tpu.dimension_semantics<parallel>, #tpu.dimension_semantics<parallel>], iteration_bounds = array<i64: 1, 1>, scalar_prefetch = 0 : i64, scratch_operands = 0 : i64, tpu.core_type = #tpu.core_type<tc>, window_params = [{transform_indices = @transform_0, window_bounds = array<i64: 16, 32>}, {transform_indices = @transform_1, window_bounds = array<i64: 32, 128>}, {transform_indices = @transform_2, window_bounds = array<i64: 1, 128>}, {transform_indices = @transform_3, window_bounds = array<i64: 16, 128>}]} {
    %c0 = arith.constant 0 : index
    %c0_0 = arith.constant 0 : index
    %0 = vector.load %arg2[%c0, %c0_0] : memref<16x32xf32, #tpu.memory_space<vmem>>, vector<16x32xf32>
    %c0_1 = arith.constant 0 : index
    %c0_2 = arith.constant 0 : index
    %1 = vector.load %arg3[%c0_1, %c0_2] : memref<32x128xf32, #tpu.memory_space<vmem>>, vector<32x128xf32>
    %cst = arith.constant dense<0.000000e+00> : vector<16x128xf32>
    %2 = tpu.matmul %0, %1, %cst {dimension_numbers = #tpu.dot_dimension_numbers<[1], [0], [0], [1], [0, 0, 1, 1], [], []>} : vector<16x32xf32>, vector<32x128xf32>, vector<16x128xf32> -> vector<16x128xf32>
    %c0_3 = arith.constant 0 : index
    %c0_4 = arith.constant 0 : index
    %3 = vector.load %arg4[%c0_3, %c0_4] : memref<1x128xf32, #tpu.memory_space<vmem>>, vector<1x128xf32>
    %4 = vector.broadcast %3 : vector<1x128xf32> to vector<16x128xf32>
    %5 = arith.addf %2, %4 : vector<16x128xf32>
    %c0_5 = arith.constant 0 : index
    %c0_6 = arith.constant 0 : index
    %6 = vector.load %arg5[%c0_5, %c0_6] : memref<16x128xf32, #tpu.memory_space<vmem>>, vector<16x128xf32>
    tpu.vector_store %arg5[%c0_5, %c0_6], %5 {strides = array<i32>} : memref<16x128xf32, #tpu.memory_space<vmem>>, vector<16x128xf32>,
    return
  }
  func.func @transform_0(%arg0: i32, %arg1: i32) -> (i32, i32) {
    %c0_i32 = arith.constant 0 : i32
    %c0_i32_0 = arith.constant 0 : i32
    return %arg0, %c0_i32 : i32, i32
  }
  func.func @transform_1(%arg0: i32, %arg1: i32) -> (i32, i32) {
    %c0_i32 = arith.constant 0 : i32
    %c0_i32_0 = arith.constant 0 : i32
    return %c0_i32, %arg1 : i32, i32
  }
  func.func @transform_2(%arg0: i32, %arg1: i32) -> (i32, i32) {
    %c0_i32 = arith.constant 0 : i32
    %c0_i32_0 = arith.constant 0 : i32
    return %c0_i32, %arg1 : i32, i32
  }
  func.func @transform_3(%arg0: i32, %arg1: i32) -> (i32, i32) {
    %c0_i32 = arith.constant 0 : i32
    return %arg0, %arg1 : i32, i32
  }
}

module attributes {stable_mosaic.version = 11 : i64} {
  func.func @gru_recurrence_kernel(%arg0: i32, %arg1: i32, %arg2: memref<8x2x96xf32, #tpu.memory_space<vmem>>, %arg3: memref<32x96xf32, #tpu.memory_space<vmem>>, %arg4: memref<1x32xf32, #tpu.memory_space<vmem>>, %arg5: memref<8x2x32xf32, #tpu.memory_space<vmem>>, %arg6: memref<2x32xf32, #tpu.memory_space<vmem>>) attributes {dimension_semantics = [#tpu.dimension_semantics<parallel>, #tpu.dimension_semantics<arbitrary>], iteration_bounds = array<i64: 1, 1>, scalar_prefetch = 0 : i64, scratch_operands = 1 : i64, tpu.core_type = #tpu.core_type<tc>, window_params = [{transform_indices = @transform_0, window_bounds = array<i64: 8, 2, 96>}, {pipeline_mode = #tpu.pipeline_mode<synchronous>, transform_indices = @transform_1, window_bounds = array<i64: 32, 96>}, {pipeline_mode = #tpu.pipeline_mode<synchronous>, transform_indices = @transform_2, window_bounds = array<i64: 1, 32>}, {transform_indices = @transform_3, window_bounds = array<i64: 8, 2, 32>}]} {
    %c0_i32 = arith.constant 0 : i32
    %0 = arith.cmpi eq, %arg1, %c0_i32 : i32
    %1 = arith.extui %0 : i1 to i32
    %c0_i32_0 = arith.constant 0 : i32
    %2 = arith.cmpi ne, %1, %c0_i32_0 : i32
    scf.if %2 {
      %cst_72 = arith.constant 0.000000e+00 : f32
      %289 = vector.broadcast %cst_72 : f32 to vector<2x32xf32>
      %c0_73 = arith.constant 0 : index
      %c0_74 = arith.constant 0 : index
      %290 = vector.load %arg6[%c0_73, %c0_74] : memref<2x32xf32, #tpu.memory_space<vmem>>, vector<2x32xf32>
      tpu.vector_store %arg6[%c0_73, %c0_74], %289 {strides = array<i32>} : memref<2x32xf32, #tpu.memory_space<vmem>>, vector<2x32xf32>,
    } else {
    }
    %c0 = arith.constant 0 : index
    %c0_1 = arith.constant 0 : index
    %3 = vector.load %arg3[%c0, %c0_1] : memref<32x96xf32, #tpu.memory_space<vmem>>, vector<32x96xf32>
    %c0_2 = arith.constant 0 : index
    %c0_3 = arith.constant 0 : index
    %4 = vector.load %arg4[%c0_2, %c0_3] : memref<1x32xf32, #tpu.memory_space<vmem>>, vector<1x32xf32>
    %5 = vector.shape_cast %4 : vector<1x32xf32> to vector<1x32xf32>
    %6 = vector.broadcast %5 : vector<1x32xf32> to vector<2x32xf32>
    %c0_4 = arith.constant 0 : index
    %c0_5 = arith.constant 0 : index
    %7 = vector.load %arg6[%c0_4, %c0_5] : memref<2x32xf32, #tpu.memory_space<vmem>>, vector<2x32xf32>
    %c0_i32_6 = arith.constant 0 : i32
    %8 = arith.index_cast %c0_i32_6 : i32 to index
    %c0_7 = arith.constant 0 : index
    %c0_8 = arith.constant 0 : index
    %9 = vector.load %arg2[%8, %c0_7, %c0_8] : memref<8x2x96xf32, #tpu.memory_space<vmem>>, vector<1x2x96xf32>
    %10 = vector.shape_cast %9 : vector<1x2x96xf32> to vector<2x96xf32>
    %cst = arith.constant dense<0.000000e+00> : vector<2x96xf32>
    %11 = tpu.matmul %7, %3, %cst {dimension_numbers = #tpu.dot_dimension_numbers<[1], [0], [0], [1], [0, 0, 1, 1], [], []>} : vector<2x32xf32>, vector<32x96xf32>, vector<2x96xf32> -> vector<2x96xf32>
    %12 = vector.extract_strided_slice %10 {offsets = [0, 0], sizes = [2, 32], strides = [1, 1]} : vector<2x96xf32> to vector<2x32xf32>
    %13 = vector.extract_strided_slice %11 {offsets = [0, 0], sizes = [2, 32], strides = [1, 1]} : vector<2x96xf32> to vector<2x32xf32>
    %14 = arith.addf %12, %13 : vector<2x32xf32>
    %15 = arith.negf %14 : vector<2x32xf32>
    %16 = math.exp %15 : vector<2x32xf32>
    %cst_9 = arith.constant 1.000000e+00 : f32
    %17 = vector.broadcast %cst_9 : f32 to vector<2x32xf32>
    %18 = arith.addf %17, %16 : vector<2x32xf32>
    %19 = arith.divf %17, %18 : vector<2x32xf32>
    %20 = vector.extract_strided_slice %10 {offsets = [0, 32], sizes = [2, 32], strides = [1, 1]} : vector<2x96xf32> to vector<2x32xf32>
    %21 = vector.extract_strided_slice %11 {offsets = [0, 32], sizes = [2, 32], strides = [1, 1]} : vector<2x96xf32> to vector<2x32xf32>
    %22 = arith.addf %20, %21 : vector<2x32xf32>
    %23 = arith.negf %22 : vector<2x32xf32>
    %24 = math.exp %23 : vector<2x32xf32>
    %cst_10 = arith.constant 1.000000e+00 : f32
    %25 = vector.broadcast %cst_10 : f32 to vector<2x32xf32>
    %26 = arith.addf %25, %24 : vector<2x32xf32>
    %27 = arith.divf %25, %26 : vector<2x32xf32>
    %28 = vector.extract_strided_slice %10 {offsets = [0, 64], sizes = [2, 32], strides = [1, 1]} : vector<2x96xf32> to vector<2x32xf32>
    %29 = vector.extract_strided_slice %11 {offsets = [0, 64], sizes = [2, 32], strides = [1, 1]} : vector<2x96xf32> to vector<2x32xf32>
    %30 = arith.addf %29, %6 : vector<2x32xf32>
    %31 = arith.mulf %19, %30 : vector<2x32xf32>
    %32 = arith.addf %28, %31 : vector<2x32xf32>
    %33 = math.tanh %32 : vector<2x32xf32>
    %cst_11 = arith.constant 1.000000e+00 : f32
    %34 = vector.broadcast %cst_11 : f32 to vector<2x32xf32>
    %35 = arith.subf %34, %27 : vector<2x32xf32>
    %36 = arith.mulf %35, %33 : vector<2x32xf32>
    %37 = arith.mulf %27, %7 : vector<2x32xf32>
    %38 = arith.addf %36, %37 : vector<2x32xf32>
    %39 = arith.index_cast %c0_i32_6 : i32 to index
    %c0_12 = arith.constant 0 : index
    %c0_13 = arith.constant 0 : index
    %40 = vector.load %arg5[%39, %c0_12, %c0_13] : memref<8x2x32xf32, #tpu.memory_space<vmem>>, vector<1x2x32xf32>
    %41 = vector.shape_cast %40 : vector<1x2x32xf32> to vector<2x32xf32>
    %42 = vector.shape_cast %38 : vector<2x32xf32> to vector<1x2x32xf32>
    tpu.vector_store %arg5[%39, %c0_12, %c0_13], %42 {strides = array<i32>} : memref<8x2x32xf32, #tpu.memory_space<vmem>>, vector<1x2x32xf32>,
    %c1_i32 = arith.constant 1 : i32
    %43 = arith.index_cast %c1_i32 : i32 to index
    %c0_14 = arith.constant 0 : index
    %c0_15 = arith.constant 0 : index
    %44 = vector.load %arg2[%43, %c0_14, %c0_15] : memref<8x2x96xf32, #tpu.memory_space<vmem>>, vector<1x2x96xf32>
    %45 = vector.shape_cast %44 : vector<1x2x96xf32> to vector<2x96xf32>
    %cst_16 = arith.constant dense<0.000000e+00> : vector<2x96xf32>
    %46 = tpu.matmul %38, %3, %cst_16 {dimension_numbers = #tpu.dot_dimension_numbers<[1], [0], [0], [1], [0, 0, 1, 1], [], []>} : vector<2x32xf32>, vector<32x96xf32>, vector<2x96xf32> -> vector<2x96xf32>
    %47 = vector.extract_strided_slice %45 {offsets = [0, 0], sizes = [2, 32], strides = [1, 1]} : vector<2x96xf32> to vector<2x32xf32>
    %48 = vector.extract_strided_slice %46 {offsets = [0, 0], sizes = [2, 32], strides = [1, 1]} : vector<2x96xf32> to vector<2x32xf32>
    %49 = arith.addf %47, %48 : vector<2x32xf32>
    %50 = arith.negf %49 : vector<2x32xf32>
    %51 = math.exp %50 : vector<2x32xf32>
    %cst_17 = arith.constant 1.000000e+00 : f32
    %52 = vector.broadcast %cst_17 : f32 to vector<2x32xf32>
    %53 = arith.addf %52, %51 : vector<2x32xf32>
    %54 = arith.divf %52, %53 : vector<2x32xf32>
    %55 = vector.extract_strided_slice %45 {offsets = [0, 32], sizes = [2, 32], strides = [1, 1]} : vector<2x96xf32> to vector<2x32xf32>
    %56 = vector.extract_strided_slice %46 {offsets = [0, 32], sizes = [2, 32], strides = [1, 1]} : vector<2x96xf32> to vector<2x32xf32>
    %57 = arith.addf %55, %56 : vector<2x32xf32>
    %58 = arith.negf %57 : vector<2x32xf32>
    %59 = math.exp %58 : vector<2x32xf32>
    %cst_18 = arith.constant 1.000000e+00 : f32
    %60 = vector.broadcast %cst_18 : f32 to vector<2x32xf32>
    %61 = arith.addf %60, %59 : vector<2x32xf32>
    %62 = arith.divf %60, %61 : vector<2x32xf32>
    %63 = vector.extract_strided_slice %45 {offsets = [0, 64], sizes = [2, 32], strides = [1, 1]} : vector<2x96xf32> to vector<2x32xf32>
    %64 = vector.extract_strided_slice %46 {offsets = [0, 64], sizes = [2, 32], strides = [1, 1]} : vector<2x96xf32> to vector<2x32xf32>
    %65 = arith.addf %64, %6 : vector<2x32xf32>
    %66 = arith.mulf %54, %65 : vector<2x32xf32>
    %67 = arith.addf %63, %66 : vector<2x32xf32>
    %68 = math.tanh %67 : vector<2x32xf32>
    %cst_19 = arith.constant 1.000000e+00 : f32
    %69 = vector.broadcast %cst_19 : f32 to vector<2x32xf32>
    %70 = arith.subf %69, %62 : vector<2x32xf32>
    %71 = arith.mulf %70, %68 : vector<2x32xf32>
    %72 = arith.mulf %62, %38 : vector<2x32xf32>
    %73 = arith.addf %71, %72 : vector<2x32xf32>
    %74 = arith.index_cast %c1_i32 : i32 to index
    %c0_20 = arith.constant 0 : index
    %c0_21 = arith.constant 0 : index
    %75 = vector.load %arg5[%74, %c0_20, %c0_21] : memref<8x2x32xf32, #tpu.memory_space<vmem>>, vector<1x2x32xf32>
    %76 = vector.shape_cast %75 : vector<1x2x32xf32> to vector<2x32xf32>
    %77 = vector.shape_cast %73 : vector<2x32xf32> to vector<1x2x32xf32>
    tpu.vector_store %arg5[%74, %c0_20, %c0_21], %77 {strides = array<i32>} : memref<8x2x32xf32, #tpu.memory_space<vmem>>, vector<1x2x32xf32>,
    %c2_i32 = arith.constant 2 : i32
    %78 = arith.index_cast %c2_i32 : i32 to index
    %c0_22 = arith.constant 0 : index
    %c0_23 = arith.constant 0 : index
    %79 = vector.load %arg2[%78, %c0_22, %c0_23] : memref<8x2x96xf32, #tpu.memory_space<vmem>>, vector<1x2x96xf32>
    %80 = vector.shape_cast %79 : vector<1x2x96xf32> to vector<2x96xf32>
    %cst_24 = arith.constant dense<0.000000e+00> : vector<2x96xf32>
    %81 = tpu.matmul %73, %3, %cst_24 {dimension_numbers = #tpu.dot_dimension_numbers<[1], [0], [0], [1], [0, 0, 1, 1], [], []>} : vector<2x32xf32>, vector<32x96xf32>, vector<2x96xf32> -> vector<2x96xf32>
    %82 = vector.extract_strided_slice %80 {offsets = [0, 0], sizes = [2, 32], strides = [1, 1]} : vector<2x96xf32> to vector<2x32xf32>
    %83 = vector.extract_strided_slice %81 {offsets = [0, 0], sizes = [2, 32], strides = [1, 1]} : vector<2x96xf32> to vector<2x32xf32>
    %84 = arith.addf %82, %83 : vector<2x32xf32>
    %85 = arith.negf %84 : vector<2x32xf32>
    %86 = math.exp %85 : vector<2x32xf32>
    %cst_25 = arith.constant 1.000000e+00 : f32
    %87 = vector.broadcast %cst_25 : f32 to vector<2x32xf32>
    %88 = arith.addf %87, %86 : vector<2x32xf32>
    %89 = arith.divf %87, %88 : vector<2x32xf32>
    %90 = vector.extract_strided_slice %80 {offsets = [0, 32], sizes = [2, 32], strides = [1, 1]} : vector<2x96xf32> to vector<2x32xf32>
    %91 = vector.extract_strided_slice %81 {offsets = [0, 32], sizes = [2, 32], strides = [1, 1]} : vector<2x96xf32> to vector<2x32xf32>
    %92 = arith.addf %90, %91 : vector<2x32xf32>
    %93 = arith.negf %92 : vector<2x32xf32>
    %94 = math.exp %93 : vector<2x32xf32>
    %cst_26 = arith.constant 1.000000e+00 : f32
    %95 = vector.broadcast %cst_26 : f32 to vector<2x32xf32>
    %96 = arith.addf %95, %94 : vector<2x32xf32>
    %97 = arith.divf %95, %96 : vector<2x32xf32>
    %98 = vector.extract_strided_slice %80 {offsets = [0, 64], sizes = [2, 32], strides = [1, 1]} : vector<2x96xf32> to vector<2x32xf32>
    %99 = vector.extract_strided_slice %81 {offsets = [0, 64], sizes = [2, 32], strides = [1, 1]} : vector<2x96xf32> to vector<2x32xf32>
    %100 = arith.addf %99, %6 : vector<2x32xf32>
    %101 = arith.mulf %89, %100 : vector<2x32xf32>
    %102 = arith.addf %98, %101 : vector<2x32xf32>
    %103 = math.tanh %102 : vector<2x32xf32>
    %cst_27 = arith.constant 1.000000e+00 : f32
    %104 = vector.broadcast %cst_27 : f32 to vector<2x32xf32>
    %105 = arith.subf %104, %97 : vector<2x32xf32>
    %106 = arith.mulf %105, %103 : vector<2x32xf32>
    %107 = arith.mulf %97, %73 : vector<2x32xf32>
    %108 = arith.addf %106, %107 : vector<2x32xf32>
    %109 = arith.index_cast %c2_i32 : i32 to index
    %c0_28 = arith.constant 0 : index
    %c0_29 = arith.constant 0 : index
    %110 = vector.load %arg5[%109, %c0_28, %c0_29] : memref<8x2x32xf32, #tpu.memory_space<vmem>>, vector<1x2x32xf32>
    %111 = vector.shape_cast %110 : vector<1x2x32xf32> to vector<2x32xf32>
    %112 = vector.shape_cast %108 : vector<2x32xf32> to vector<1x2x32xf32>
    tpu.vector_store %arg5[%109, %c0_28, %c0_29], %112 {strides = array<i32>} : memref<8x2x32xf32, #tpu.memory_space<vmem>>, vector<1x2x32xf32>,
    %c3_i32 = arith.constant 3 : i32
    %113 = arith.index_cast %c3_i32 : i32 to index
    %c0_30 = arith.constant 0 : index
    %c0_31 = arith.constant 0 : index
    %114 = vector.load %arg2[%113, %c0_30, %c0_31] : memref<8x2x96xf32, #tpu.memory_space<vmem>>, vector<1x2x96xf32>
    %115 = vector.shape_cast %114 : vector<1x2x96xf32> to vector<2x96xf32>
    %cst_32 = arith.constant dense<0.000000e+00> : vector<2x96xf32>
    %116 = tpu.matmul %108, %3, %cst_32 {dimension_numbers = #tpu.dot_dimension_numbers<[1], [0], [0], [1], [0, 0, 1, 1], [], []>} : vector<2x32xf32>, vector<32x96xf32>, vector<2x96xf32> -> vector<2x96xf32>
    %117 = vector.extract_strided_slice %115 {offsets = [0, 0], sizes = [2, 32], strides = [1, 1]} : vector<2x96xf32> to vector<2x32xf32>
    %118 = vector.extract_strided_slice %116 {offsets = [0, 0], sizes = [2, 32], strides = [1, 1]} : vector<2x96xf32> to vector<2x32xf32>
    %119 = arith.addf %117, %118 : vector<2x32xf32>
    %120 = arith.negf %119 : vector<2x32xf32>
    %121 = math.exp %120 : vector<2x32xf32>
    %cst_33 = arith.constant 1.000000e+00 : f32
    %122 = vector.broadcast %cst_33 : f32 to vector<2x32xf32>
    %123 = arith.addf %122, %121 : vector<2x32xf32>
    %124 = arith.divf %122, %123 : vector<2x32xf32>
    %125 = vector.extract_strided_slice %115 {offsets = [0, 32], sizes = [2, 32], strides = [1, 1]} : vector<2x96xf32> to vector<2x32xf32>
    %126 = vector.extract_strided_slice %116 {offsets = [0, 32], sizes = [2, 32], strides = [1, 1]} : vector<2x96xf32> to vector<2x32xf32>
    %127 = arith.addf %125, %126 : vector<2x32xf32>
    %128 = arith.negf %127 : vector<2x32xf32>
    %129 = math.exp %128 : vector<2x32xf32>
    %cst_34 = arith.constant 1.000000e+00 : f32
    %130 = vector.broadcast %cst_34 : f32 to vector<2x32xf32>
    %131 = arith.addf %130, %129 : vector<2x32xf32>
    %132 = arith.divf %130, %131 : vector<2x32xf32>
    %133 = vector.extract_strided_slice %115 {offsets = [0, 64], sizes = [2, 32], strides = [1, 1]} : vector<2x96xf32> to vector<2x32xf32>
    %134 = vector.extract_strided_slice %116 {offsets = [0, 64], sizes = [2, 32], strides = [1, 1]} : vector<2x96xf32> to vector<2x32xf32>
    %135 = arith.addf %134, %6 : vector<2x32xf32>
    %136 = arith.mulf %124, %135 : vector<2x32xf32>
    %137 = arith.addf %133, %136 : vector<2x32xf32>
    %138 = math.tanh %137 : vector<2x32xf32>
    %cst_35 = arith.constant 1.000000e+00 : f32
    %139 = vector.broadcast %cst_35 : f32 to vector<2x32xf32>
    %140 = arith.subf %139, %132 : vector<2x32xf32>
    %141 = arith.mulf %140, %138 : vector<2x32xf32>
    %142 = arith.mulf %132, %108 : vector<2x32xf32>
    %143 = arith.addf %141, %142 : vector<2x32xf32>
    %144 = arith.index_cast %c3_i32 : i32 to index
    %c0_36 = arith.constant 0 : index
    %c0_37 = arith.constant 0 : index
    %145 = vector.load %arg5[%144, %c0_36, %c0_37] : memref<8x2x32xf32, #tpu.memory_space<vmem>>, vector<1x2x32xf32>
    %146 = vector.shape_cast %145 : vector<1x2x32xf32> to vector<2x32xf32>
    %147 = vector.shape_cast %143 : vector<2x32xf32> to vector<1x2x32xf32>
    tpu.vector_store %arg5[%144, %c0_36, %c0_37], %147 {strides = array<i32>} : memref<8x2x32xf32, #tpu.memory_space<vmem>>, vector<1x2x32xf32>,
    %c4_i32 = arith.constant 4 : i32
    %148 = arith.index_cast %c4_i32 : i32 to index
    %c0_38 = arith.constant 0 : index
    %c0_39 = arith.constant 0 : index
    %149 = vector.load %arg2[%148, %c0_38, %c0_39] : memref<8x2x96xf32, #tpu.memory_space<vmem>>, vector<1x2x96xf32>
    %150 = vector.shape_cast %149 : vector<1x2x96xf32> to vector<2x96xf32>
    %cst_40 = arith.constant dense<0.000000e+00> : vector<2x96xf32>
    %151 = tpu.matmul %143, %3, %cst_40 {dimension_numbers = #tpu.dot_dimension_numbers<[1], [0], [0], [1], [0, 0, 1, 1], [], []>} : vector<2x32xf32>, vector<32x96xf32>, vector<2x96xf32> -> vector<2x96xf32>
    %152 = vector.extract_strided_slice %150 {offsets = [0, 0], sizes = [2, 32], strides = [1, 1]} : vector<2x96xf32> to vector<2x32xf32>
    %153 = vector.extract_strided_slice %151 {offsets = [0, 0], sizes = [2, 32], strides = [1, 1]} : vector<2x96xf32> to vector<2x32xf32>
    %154 = arith.addf %152, %153 : vector<2x32xf32>
    %155 = arith.negf %154 : vector<2x32xf32>
    %156 = math.exp %155 : vector<2x32xf32>
    %cst_41 = arith.constant 1.000000e+00 : f32
    %157 = vector.broadcast %cst_41 : f32 to vector<2x32xf32>
    %158 = arith.addf %157, %156 : vector<2x32xf32>
    %159 = arith.divf %157, %158 : vector<2x32xf32>
    %160 = vector.extract_strided_slice %150 {offsets = [0, 32], sizes = [2, 32], strides = [1, 1]} : vector<2x96xf32> to vector<2x32xf32>
    %161 = vector.extract_strided_slice %151 {offsets = [0, 32], sizes = [2, 32], strides = [1, 1]} : vector<2x96xf32> to vector<2x32xf32>
    %162 = arith.addf %160, %161 : vector<2x32xf32>
    %163 = arith.negf %162 : vector<2x32xf32>
    %164 = math.exp %163 : vector<2x32xf32>
    %cst_42 = arith.constant 1.000000e+00 : f32
    %165 = vector.broadcast %cst_42 : f32 to vector<2x32xf32>
    %166 = arith.addf %165, %164 : vector<2x32xf32>
    %167 = arith.divf %165, %166 : vector<2x32xf32>
    %168 = vector.extract_strided_slice %150 {offsets = [0, 64], sizes = [2, 32], strides = [1, 1]} : vector<2x96xf32> to vector<2x32xf32>
    %169 = vector.extract_strided_slice %151 {offsets = [0, 64], sizes = [2, 32], strides = [1, 1]} : vector<2x96xf32> to vector<2x32xf32>
    %170 = arith.addf %169, %6 : vector<2x32xf32>
    %171 = arith.mulf %159, %170 : vector<2x32xf32>
    %172 = arith.addf %168, %171 : vector<2x32xf32>
    %173 = math.tanh %172 : vector<2x32xf32>
    %cst_43 = arith.constant 1.000000e+00 : f32
    %174 = vector.broadcast %cst_43 : f32 to vector<2x32xf32>
    %175 = arith.subf %174, %167 : vector<2x32xf32>
    %176 = arith.mulf %175, %173 : vector<2x32xf32>
    %177 = arith.mulf %167, %143 : vector<2x32xf32>
    %178 = arith.addf %176, %177 : vector<2x32xf32>
    %179 = arith.index_cast %c4_i32 : i32 to index
    %c0_44 = arith.constant 0 : index
    %c0_45 = arith.constant 0 : index
    %180 = vector.load %arg5[%179, %c0_44, %c0_45] : memref<8x2x32xf32, #tpu.memory_space<vmem>>, vector<1x2x32xf32>
    %181 = vector.shape_cast %180 : vector<1x2x32xf32> to vector<2x32xf32>
    %182 = vector.shape_cast %178 : vector<2x32xf32> to vector<1x2x32xf32>
    tpu.vector_store %arg5[%179, %c0_44, %c0_45], %182 {strides = array<i32>} : memref<8x2x32xf32, #tpu.memory_space<vmem>>, vector<1x2x32xf32>,
    %c5_i32 = arith.constant 5 : i32
    %183 = arith.index_cast %c5_i32 : i32 to index
    %c0_46 = arith.constant 0 : index
    %c0_47 = arith.constant 0 : index
    %184 = vector.load %arg2[%183, %c0_46, %c0_47] : memref<8x2x96xf32, #tpu.memory_space<vmem>>, vector<1x2x96xf32>
    %185 = vector.shape_cast %184 : vector<1x2x96xf32> to vector<2x96xf32>
    %cst_48 = arith.constant dense<0.000000e+00> : vector<2x96xf32>
    %186 = tpu.matmul %178, %3, %cst_48 {dimension_numbers = #tpu.dot_dimension_numbers<[1], [0], [0], [1], [0, 0, 1, 1], [], []>} : vector<2x32xf32>, vector<32x96xf32>, vector<2x96xf32> -> vector<2x96xf32>
    %187 = vector.extract_strided_slice %185 {offsets = [0, 0], sizes = [2, 32], strides = [1, 1]} : vector<2x96xf32> to vector<2x32xf32>
    %188 = vector.extract_strided_slice %186 {offsets = [0, 0], sizes = [2, 32], strides = [1, 1]} : vector<2x96xf32> to vector<2x32xf32>
    %189 = arith.addf %187, %188 : vector<2x32xf32>
    %190 = arith.negf %189 : vector<2x32xf32>
    %191 = math.exp %190 : vector<2x32xf32>
    %cst_49 = arith.constant 1.000000e+00 : f32
    %192 = vector.broadcast %cst_49 : f32 to vector<2x32xf32>
    %193 = arith.addf %192, %191 : vector<2x32xf32>
    %194 = arith.divf %192, %193 : vector<2x32xf32>
    %195 = vector.extract_strided_slice %185 {offsets = [0, 32], sizes = [2, 32], strides = [1, 1]} : vector<2x96xf32> to vector<2x32xf32>
    %196 = vector.extract_strided_slice %186 {offsets = [0, 32], sizes = [2, 32], strides = [1, 1]} : vector<2x96xf32> to vector<2x32xf32>
    %197 = arith.addf %195, %196 : vector<2x32xf32>
    %198 = arith.negf %197 : vector<2x32xf32>
    %199 = math.exp %198 : vector<2x32xf32>
    %cst_50 = arith.constant 1.000000e+00 : f32
    %200 = vector.broadcast %cst_50 : f32 to vector<2x32xf32>
    %201 = arith.addf %200, %199 : vector<2x32xf32>
    %202 = arith.divf %200, %201 : vector<2x32xf32>
    %203 = vector.extract_strided_slice %185 {offsets = [0, 64], sizes = [2, 32], strides = [1, 1]} : vector<2x96xf32> to vector<2x32xf32>
    %204 = vector.extract_strided_slice %186 {offsets = [0, 64], sizes = [2, 32], strides = [1, 1]} : vector<2x96xf32> to vector<2x32xf32>
    %205 = arith.addf %204, %6 : vector<2x32xf32>
    %206 = arith.mulf %194, %205 : vector<2x32xf32>
    %207 = arith.addf %203, %206 : vector<2x32xf32>
    %208 = math.tanh %207 : vector<2x32xf32>
    %cst_51 = arith.constant 1.000000e+00 : f32
    %209 = vector.broadcast %cst_51 : f32 to vector<2x32xf32>
    %210 = arith.subf %209, %202 : vector<2x32xf32>
    %211 = arith.mulf %210, %208 : vector<2x32xf32>
    %212 = arith.mulf %202, %178 : vector<2x32xf32>
    %213 = arith.addf %211, %212 : vector<2x32xf32>
    %214 = arith.index_cast %c5_i32 : i32 to index
    %c0_52 = arith.constant 0 : index
    %c0_53 = arith.constant 0 : index
    %215 = vector.load %arg5[%214, %c0_52, %c0_53] : memref<8x2x32xf32, #tpu.memory_space<vmem>>, vector<1x2x32xf32>
    %216 = vector.shape_cast %215 : vector<1x2x32xf32> to vector<2x32xf32>
    %217 = vector.shape_cast %213 : vector<2x32xf32> to vector<1x2x32xf32>
    tpu.vector_store %arg5[%214, %c0_52, %c0_53], %217 {strides = array<i32>} : memref<8x2x32xf32, #tpu.memory_space<vmem>>, vector<1x2x32xf32>,
    %c6_i32 = arith.constant 6 : i32
    %218 = arith.index_cast %c6_i32 : i32 to index
    %c0_54 = arith.constant 0 : index
    %c0_55 = arith.constant 0 : index
    %219 = vector.load %arg2[%218, %c0_54, %c0_55] : memref<8x2x96xf32, #tpu.memory_space<vmem>>, vector<1x2x96xf32>
    %220 = vector.shape_cast %219 : vector<1x2x96xf32> to vector<2x96xf32>
    %cst_56 = arith.constant dense<0.000000e+00> : vector<2x96xf32>
    %221 = tpu.matmul %213, %3, %cst_56 {dimension_numbers = #tpu.dot_dimension_numbers<[1], [0], [0], [1], [0, 0, 1, 1], [], []>} : vector<2x32xf32>, vector<32x96xf32>, vector<2x96xf32> -> vector<2x96xf32>
    %222 = vector.extract_strided_slice %220 {offsets = [0, 0], sizes = [2, 32], strides = [1, 1]} : vector<2x96xf32> to vector<2x32xf32>
    %223 = vector.extract_strided_slice %221 {offsets = [0, 0], sizes = [2, 32], strides = [1, 1]} : vector<2x96xf32> to vector<2x32xf32>
    %224 = arith.addf %222, %223 : vector<2x32xf32>
    %225 = arith.negf %224 : vector<2x32xf32>
    %226 = math.exp %225 : vector<2x32xf32>
    %cst_57 = arith.constant 1.000000e+00 : f32
    %227 = vector.broadcast %cst_57 : f32 to vector<2x32xf32>
    %228 = arith.addf %227, %226 : vector<2x32xf32>
    %229 = arith.divf %227, %228 : vector<2x32xf32>
    %230 = vector.extract_strided_slice %220 {offsets = [0, 32], sizes = [2, 32], strides = [1, 1]} : vector<2x96xf32> to vector<2x32xf32>
    %231 = vector.extract_strided_slice %221 {offsets = [0, 32], sizes = [2, 32], strides = [1, 1]} : vector<2x96xf32> to vector<2x32xf32>
    %232 = arith.addf %230, %231 : vector<2x32xf32>
    %233 = arith.negf %232 : vector<2x32xf32>
    %234 = math.exp %233 : vector<2x32xf32>
    %cst_58 = arith.constant 1.000000e+00 : f32
    %235 = vector.broadcast %cst_58 : f32 to vector<2x32xf32>
    %236 = arith.addf %235, %234 : vector<2x32xf32>
    %237 = arith.divf %235, %236 : vector<2x32xf32>
    %238 = vector.extract_strided_slice %220 {offsets = [0, 64], sizes = [2, 32], strides = [1, 1]} : vector<2x96xf32> to vector<2x32xf32>
    %239 = vector.extract_strided_slice %221 {offsets = [0, 64], sizes = [2, 32], strides = [1, 1]} : vector<2x96xf32> to vector<2x32xf32>
    %240 = arith.addf %239, %6 : vector<2x32xf32>
    %241 = arith.mulf %229, %240 : vector<2x32xf32>
    %242 = arith.addf %238, %241 : vector<2x32xf32>
    %243 = math.tanh %242 : vector<2x32xf32>
    %cst_59 = arith.constant 1.000000e+00 : f32
    %244 = vector.broadcast %cst_59 : f32 to vector<2x32xf32>
    %245 = arith.subf %244, %237 : vector<2x32xf32>
    %246 = arith.mulf %245, %243 : vector<2x32xf32>
    %247 = arith.mulf %237, %213 : vector<2x32xf32>
    %248 = arith.addf %246, %247 : vector<2x32xf32>
    %249 = arith.index_cast %c6_i32 : i32 to index
    %c0_60 = arith.constant 0 : index
    %c0_61 = arith.constant 0 : index
    %250 = vector.load %arg5[%249, %c0_60, %c0_61] : memref<8x2x32xf32, #tpu.memory_space<vmem>>, vector<1x2x32xf32>
    %251 = vector.shape_cast %250 : vector<1x2x32xf32> to vector<2x32xf32>
    %252 = vector.shape_cast %248 : vector<2x32xf32> to vector<1x2x32xf32>
    tpu.vector_store %arg5[%249, %c0_60, %c0_61], %252 {strides = array<i32>} : memref<8x2x32xf32, #tpu.memory_space<vmem>>, vector<1x2x32xf32>,
    %c7_i32 = arith.constant 7 : i32
    %253 = arith.index_cast %c7_i32 : i32 to index
    %c0_62 = arith.constant 0 : index
    %c0_63 = arith.constant 0 : index
    %254 = vector.load %arg2[%253, %c0_62, %c0_63] : memref<8x2x96xf32, #tpu.memory_space<vmem>>, vector<1x2x96xf32>
    %255 = vector.shape_cast %254 : vector<1x2x96xf32> to vector<2x96xf32>
    %cst_64 = arith.constant dense<0.000000e+00> : vector<2x96xf32>
    %256 = tpu.matmul %248, %3, %cst_64 {dimension_numbers = #tpu.dot_dimension_numbers<[1], [0], [0], [1], [0, 0, 1, 1], [], []>} : vector<2x32xf32>, vector<32x96xf32>, vector<2x96xf32> -> vector<2x96xf32>
    %257 = vector.extract_strided_slice %255 {offsets = [0, 0], sizes = [2, 32], strides = [1, 1]} : vector<2x96xf32> to vector<2x32xf32>
    %258 = vector.extract_strided_slice %256 {offsets = [0, 0], sizes = [2, 32], strides = [1, 1]} : vector<2x96xf32> to vector<2x32xf32>
    %259 = arith.addf %257, %258 : vector<2x32xf32>
    %260 = arith.negf %259 : vector<2x32xf32>
    %261 = math.exp %260 : vector<2x32xf32>
    %cst_65 = arith.constant 1.000000e+00 : f32
    %262 = vector.broadcast %cst_65 : f32 to vector<2x32xf32>
    %263 = arith.addf %262, %261 : vector<2x32xf32>
    %264 = arith.divf %262, %263 : vector<2x32xf32>
    %265 = vector.extract_strided_slice %255 {offsets = [0, 32], sizes = [2, 32], strides = [1, 1]} : vector<2x96xf32> to vector<2x32xf32>
    %266 = vector.extract_strided_slice %256 {offsets = [0, 32], sizes = [2, 32], strides = [1, 1]} : vector<2x96xf32> to vector<2x32xf32>
    %267 = arith.addf %265, %266 : vector<2x32xf32>
    %268 = arith.negf %267 : vector<2x32xf32>
    %269 = math.exp %268 : vector<2x32xf32>
    %cst_66 = arith.constant 1.000000e+00 : f32
    %270 = vector.broadcast %cst_66 : f32 to vector<2x32xf32>
    %271 = arith.addf %270, %269 : vector<2x32xf32>
    %272 = arith.divf %270, %271 : vector<2x32xf32>
    %273 = vector.extract_strided_slice %255 {offsets = [0, 64], sizes = [2, 32], strides = [1, 1]} : vector<2x96xf32> to vector<2x32xf32>
    %274 = vector.extract_strided_slice %256 {offsets = [0, 64], sizes = [2, 32], strides = [1, 1]} : vector<2x96xf32> to vector<2x32xf32>
    %275 = arith.addf %274, %6 : vector<2x32xf32>
    %276 = arith.mulf %264, %275 : vector<2x32xf32>
    %277 = arith.addf %273, %276 : vector<2x32xf32>
    %278 = math.tanh %277 : vector<2x32xf32>
    %cst_67 = arith.constant 1.000000e+00 : f32
    %279 = vector.broadcast %cst_67 : f32 to vector<2x32xf32>
    %280 = arith.subf %279, %272 : vector<2x32xf32>
    %281 = arith.mulf %280, %278 : vector<2x32xf32>
    %282 = arith.mulf %272, %248 : vector<2x32xf32>
    %283 = arith.addf %281, %282 : vector<2x32xf32>
    %284 = arith.index_cast %c7_i32 : i32 to index
    %c0_68 = arith.constant 0 : index
    %c0_69 = arith.constant 0 : index
    %285 = vector.load %arg5[%284, %c0_68, %c0_69] : memref<8x2x32xf32, #tpu.memory_space<vmem>>, vector<1x2x32xf32>
    %286 = vector.shape_cast %285 : vector<1x2x32xf32> to vector<2x32xf32>
    %287 = vector.shape_cast %283 : vector<2x32xf32> to vector<1x2x32xf32>
    tpu.vector_store %arg5[%284, %c0_68, %c0_69], %287 {strides = array<i32>} : memref<8x2x32xf32, #tpu.memory_space<vmem>>, vector<1x2x32xf32>,
    %c8_i32 = arith.constant 8 : i32
    %c0_70 = arith.constant 0 : index
    %c0_71 = arith.constant 0 : index
    %288 = vector.load %arg6[%c0_70, %c0_71] : memref<2x32xf32, #tpu.memory_space<vmem>>, vector<2x32xf32>
    tpu.vector_store %arg6[%c0_70, %c0_71], %283 {strides = array<i32>} : memref<2x32xf32, #tpu.memory_space<vmem>>, vector<2x32xf32>,
    return
  }
  func.func @transform_0(%arg0: i32, %arg1: i32) -> (i32, i32, i32) {
    %c0_i32 = arith.constant 0 : i32
    %c0_i32_0 = arith.constant 0 : i32
    return %arg1, %arg0, %c0_i32 : i32, i32, i32
  }
  func.func @transform_1(%arg0: i32, %arg1: i32) -> (i32, i32) {
    %c0_i32 = arith.constant 0 : i32
    %c0_i32_0 = arith.constant 0 : i32
    %c0_i32_1 = arith.constant 0 : i32
    return %c0_i32, %c0_i32_0 : i32, i32
  }
  func.func @transform_2(%arg0: i32, %arg1: i32) -> (i32, i32) {
    %c0_i32 = arith.constant 0 : i32
    %c0_i32_0 = arith.constant 0 : i32
    %c0_i32_1 = arith.constant 0 : i32
    return %c0_i32, %c0_i32_0 : i32, i32
  }
  func.func @transform_3(%arg0: i32, %arg1: i32) -> (i32, i32, i32) {
    %c0_i32 = arith.constant 0 : i32
    %c0_i32_0 = arith.constant 0 : i32
    return %arg1, %arg0, %c0_i32 : i32, i32, i32
  }
}

</mosaic_0001>

<bundles_post_ra>
// kernel: vanilla_gru_forward.5
= control target key start
LH: loop header
LB: loop body
LE: loop exit
PB: predicated region body
PF: predicated region fallthrough
CT: control target
= control target key end

     0   :  { %vm27_vm0 = vcmask 261120   ;;  %s190_s1 = inlined_call_operand.vmem [shape: f32[32,128], index: 1, kind: input, shape index: {}]   ;;  %s191_s0 = inlined_call_operand.vmem [shape: f32[16,32], index: 0, kind: input, shape index: {}]   ;;  %s192_s2 = inlined_call_operand.vmem [shape: f32[1,128], index: 2, kind: input, shape index: {}]   ;;  %s193_s3 = inlined_call_operand.vmem [shape: f32[16,128], index: 3, kind: output, shape index: {}]  }
   0x1   :  { %v16_v0 = vld [vmem:[%s190_s1] sm:$0xff]  ;;  %v17_v1 = vld [vmem:[%s190_s1 + $0x8] sm:$0xff]  ;;  %v18_v2 = vld [vmem:[%s190_s1 + $0x10] sm:$0xff] }
   0x2   :  { %v135_v3 = vpack.c.bf16 %v17_v1, %v16_v0  ;;  %v19_v4 = vld [vmem:[%s190_s1 + $0x18] sm:$0xff]  ;;  %v14_v5 = vld [vmem:[%s191_s0] sm:$0xff]  ;;  %v15_v7 = vld [vmem:[%s191_s0 + $0x8] sm:$0xff] }
   0x3   :  { %v139_v6 = vpack.c.bf16 %v19_v4, %v18_v2  ;;  %132 = vmatprep.mubr.msk.f32.mxu0 %vm27_vm0, %v14_v5  ;;  %v115_v8 = vld [vmem:[%s192_s2] ss:$0 sm:$0xff] }
   0x4   :  { %136 = vmatprep.subr.bf16.mxu0 %v135_v3 }
   0x5   :  { %138 = vmatpush3.bf16.msra.mxu0 %v135_v3 }
   0x6   :  { %140 = vmatprep.subr.bf16.mxu0 %v139_v6 }
   0x9   :  { %142 = vmatpush3.bf16.msra.mxu0 %v139_v6 }
   0xc   :  { %133 = vmatmul.mubr.msk.f32.vlgmr.msra.gmra.mrb[0].mxu0 %vm27_vm0, %v15_v7 }
  0xdf   :  { %v134_v9 = vpop.f32.mrb[0].mxu0 }
  0xe0   :  { %v106_v10 = vadd.f32 %v134_v9, %v115_v8  ;;  %v100_v11 = vpop.f32.mrb[1].mxu0 }
  0xe1   :  { %v101_v12 = vadd.f32 %v115_v8, %v100_v11 }
  0xe2   :  { %110 = vst [vmem:[%s193_s3 + $0x8] sm:$0xff] %v106_v10 }
  0xe3   :  { %109 = vst [vmem:[%s193_s3] sm:$0xff] %v101_v12 }

// kernel: vanilla_gru_forward.6
= control target key start
LH: loop header
LB: loop body
LE: loop exit
PB: predicated region body
PF: predicated region fallthrough
CT: control target
= control target key end

     0   :  { %vm18_vm0 = vcmask 254976   ;;  %v1160_v0 = vmov 0.0|0.0   ;;  %vm1161_vm1 = vmmov 0   ;;  %v1162_v4 = vmov 0.0   ;;  %s1163_s22 = smov 64   ;;  %s1165_s24 = smov 96   ;;  %s1363_s1 = inlined_call_operand.vmem [shape: f32[32,96], index: 1, kind: input, shape index: {}]   ;;  %s1364_s2 = inlined_call_operand.vmem [shape: f32[1,32], index: 2, kind: input, shape index: {}]   ;;  %s1365_s0 = inlined_call_operand.vmem [shape: f32[8,2,96], index: 0, kind: input, shape index: {}]   ;;  %s1366_s3 = inlined_call_operand.vmem [shape: f32[8,2,32], index: 3, kind: output, shape index: {}]  }
   0x1   :  { %1058 = vmatprep.subr.bf16.mxu0 %v1160_v0  ;;  %v20_v1 = vld [vmem:[%s1363_s1] sm:$0xff]  ;;  %v21_v2 = vld [vmem:[%s1363_s1 + $0x8] sm:$0xff]  ;;  %v22_v3 = vld [vmem:[%s1363_s1 + $0x10] sm:$0xff]  ;;  %978 = vmatprep.mubr.msk.f32.mxu0 %vm1161_vm1, %v1162_v4  ;;  %19 = vst.msk [vmem:[#allocation2] sm:$0x3] %vm18_vm0, %v1162_v4  ;;  %vm32_vm2 = vcmask 261120  }
   0x2   :  { %v1200_v5 = vpack.c.bf16 %v21_v2, %v20_v1  ;;  %v23_v6 = vld [vmem:[%s1363_s1 + $0x18] sm:$0xff]  ;;  %v899_v7 = vld [vmem:[%s1364_s2] ss:$0 sm:$0xff]  ;;  %1064 = vmatprep.subr.bf16.mxu1 %v1160_v0  ;;  %989 = vmatprep.mubr.msk.f32.mxu1 %vm1161_vm1, %v1162_v4  ;;  %s1164_s1 = smov 32   ;;  %v902_v35 = vld [vmem:[%s1365_s0 + $0x2] sm:$0x3] }
   0x3   :  { %113 = vrot.lane.b32.xlu0 %v899_v7, %s1163_s22  ;;  %v1213_v8 = vpack.c.bf16 %v23_v6, %v22_v3  ;;  %v31_v14 = vld [vmem:[%s1365_s0] sm:$0x3]  ;;  %v906_v55 = vld [vmem:[%s1365_s0 + $0x4] sm:$0x3] }
   0x4   :  { %1060 = vmatpush3.bf16.msra.mxu0 %v1200_v5  ;;  %1066 = vmatpush3.bf16.msra.mxu1 %v1200_v5 }
   0x5   :  { %1061 = vmatprep.subr.bf16.mxu0 %v1160_v0  ;;  %1067 = vmatprep.subr.bf16.mxu1 %v1160_v0 }
   0x8   :  { %1063 = vmatpush3.bf16.msra.mxu0 %v1213_v8  ;;  %v30_v9 = vld [vmem:[#allocation2] sm:$0x3]  ;;  %1069 = vmatpush3.bf16.msra.mxu1 %v1213_v8 }
   0x9   :  { %1070 = vmatprep.subr.bf16.mxu0 %v1160_v0  ;;  %1076 = vmatprep.subr.bf16.mxu1 %v1160_v0 }
   0xb   :  { %979 = vmatmul.mubr.msk.f32.vlgmr.msra.gmra.mrb[0].mxu0 %vm32_vm2, %v30_v9 }
   0xc   :  { %1072 = vmatpush3.bf16.msra.mxu0 %v1200_v5  ;;  %1000 = vmatprep.mubr.msk.f32.mxu0 %vm1161_vm1, %v1162_v4 }
   0xd   :  { %1073 = vmatprep.subr.bf16.mxu0 %v1160_v0 }
  0x10   :  { %1075 = vmatpush3.bf16.msra.mxu0 %v1213_v8 }
  0x11   :  { %1082 = vmatprep.subr.bf16.mxu0 %v1160_v0 }
  0x75   :  { %v1229_v10 = vpop.permute.xlu0 %113 }
  0xde   :  { %v102_v11 = vpop.f32.mrb[0].mxu0 }
  0xdf   :  { %v116_v12 = vadd.f32 %v1229_v10, %v102_v11  ;;  %v980_v13 = vpop.f32.mrb[1].mxu0  ;;  %v106_v15 = vadd.f32 %v102_v11, %v31_v14 }
  0xe1   :  { %118 = vrot.lane.b32.xlu0 %v116_v12, %s1163_s22  ;;  %v901_v16 = vmul.f32 -1.442695, %v106_v15 }
  0xe3   :  { %1112 = vpow2.f32 %v901_v16  ;;  %v910_v16 = vld [vmem:[%s1365_s0 + $0x6] sm:$0x3] }
  0xe5   :  { %134 = vrot.lane.b32.xlu0 %v30_v9, %s1164_s1 }
  0xed   :  { %v1113_v17 = vpop.eup %1112 }
  0xee   :  { %v110_v18 = vadd.f32 1.0, %v1113_v17 }
  0xf0   :  { %1114 = vrcp.f32 %v110_v18 }
  0xfa   :  { %v1115_v19 = vpop.eup %1114 }
  0xfb   :  { %v128_v26 = vsub.f32 1.0, %v1115_v19 }
 0x153   :  { %v119_v20 = vpop.permute.xlu0 %118 }
 0x154   :  { %v121_v21 = vmul.f32 %v1115_v19, %v119_v20 }
 0x156   :  { %123 = vrot.lane.b32.xlu1 %v121_v21, %s1163_s22 }
 0x157   :  { %v135_v25 = vpop.permute.xlu0 %134 }
 0x158   :  { %v137_v28 = vmul.f32 %v1115_v19, %v135_v25 }
 0x1c8   :  { %v124_v22 = vpop.permute.xlu1 %123 }
 0x1c9   :  { %v126_v23 = vadd.f32 %v124_v22, %v31_v14 }
 0x1cb   :  { %1116 = vtanh.f32 %v126_v23 }
 0x1d5   :  { %v1117_v24 = vpop.eup %1116 }
 0x1d6   :  { %130 = vrot.lane.b32.xlu1 %v1117_v24, %s1165_s24 }
 0x248   :  { %v131_v27 = vpop.permute.xlu1 %130 }
 0x249   :  { %v133_v29 = vmul.f32 %v131_v27, %v128_v26 }
 0x24b   :  { %v138_v30 = vadd.f32 %v137_v28, %v133_v29 }
 0x24d   :  { %140 = vrot.lane.b32.xlu1 %v138_v30, %s1165_s24 }
 0x2bf   :  { %v141_v31 = vpop.permute.xlu1 %140 }
 0x2c0   :  { %144 = vst.msk [vmem:[%s1366_s3] sm:$0x3] %vm18_vm0, %v141_v31  ;;  %990 = vmatmul.mubr.msk.f32.vlgmr.msra.gmra.mrb[0].mxu1 %vm32_vm2, %v141_v31 }
 0x2c1   :  { %1078 = vmatpush3.bf16.msra.mxu1 %v1200_v5  ;;  %1011 = vmatprep.mubr.msk.f32.mxu1 %vm1161_vm1, %v1162_v4 }
 0x2c2   :  { %1079 = vmatprep.subr.bf16.mxu1 %v1160_v0 }
 0x2c5   :  { %1081 = vmatpush3.bf16.msra.mxu1 %v1213_v8 }
 0x2c6   :  { %1088 = vmatprep.subr.bf16.mxu1 %v1160_v0 }
 0x393   :  { %v215_v32 = vpop.f32.mrb[0].mxu1 }
 0x394   :  { %v226_v33 = vadd.f32 %v215_v32, %v1229_v10  ;;  %v991_v34 = vpop.f32.mrb[1].mxu1  ;;  %v219_v36 = vadd.f32 %v902_v35, %v215_v32 }
 0x396   :  { %228 = vrot.lane.b32.xlu0 %v226_v33, %s1163_s22  ;;  %v904_v37 = vmul.f32 -1.442695, %v219_v36  ;;  %v914_v36 = vld [vmem:[%s1365_s0 + $0x8] sm:$0x3] }
 0x398   :  { %1118 = vpow2.f32 %v904_v37 }
 0x3a2   :  { %v1119_v38 = vpop.eup %1118 }
 0x3a3   :  { %v223_v39 = vadd.f32 1.0, %v1119_v38 }
 0x3a5   :  { %1120 = vrcp.f32 %v223_v39 }
 0x3af   :  { %v1121_v40 = vpop.eup %1120 }
 0x3b0   :  { %v238_v46 = vsub.f32 1.0, %v1121_v40  ;;  %v244_v48 = vmul.f32 %v1121_v40, %v138_v30 }
 0x408   :  { %v229_v41 = vpop.permute.xlu0 %228 }
 0x409   :  { %v231_v42 = vmul.f32 %v1121_v40, %v229_v41 }
 0x40b   :  { %233 = vrot.lane.b32.xlu1 %v231_v42, %s1163_s22 }
 0x47d   :  { %v234_v43 = vpop.permute.xlu1 %233 }
 0x47e   :  { %v236_v44 = vadd.f32 %v902_v35, %v234_v43 }
 0x480   :  { %1122 = vtanh.f32 %v236_v44 }
 0x48a   :  { %v1123_v45 = vpop.eup %1122 }
 0x48b   :  { %240 = vrot.lane.b32.xlu0 %v1123_v45, %s1165_s24 }
 0x4fd   :  { %v241_v47 = vpop.permute.xlu0 %240 }
 0x4fe   :  { %v243_v49 = vmul.f32 %v241_v47, %v238_v46 }
 0x500   :  { %v245_v50 = vadd.f32 %v244_v48, %v243_v49 }
 0x502   :  { %247 = vrot.lane.b32.xlu1 %v245_v50, %s1165_s24 }
 0x574   :  { %v248_v51 = vpop.permute.xlu1 %247 }
 0x575   :  { %905 = vst.msk [vmem:[%s1366_s3 + $0x2] sm:$0x3] %vm18_vm0, %v248_v51  ;;  %1001 = vmatmul.mubr.msk.f32.vlgmr.msra.gmra.mrb[2].mxu0 %vm32_vm2, %v248_v51 }
 0x576   :  { %1084 = vmatpush3.bf16.msra.mxu0 %v1200_v5  ;;  %1022 = vmatprep.mubr.msk.f32.mxu0 %vm1161_vm1, %v1162_v4 }
 0x577   :  { %1085 = vmatprep.subr.bf16.mxu0 %v1160_v0 }
 0x57a   :  { %1087 = vmatpush3.bf16.msra.mxu0 %v1213_v8 }
 0x57b   :  { %1094 = vmatprep.subr.bf16.mxu0 %v1160_v0 }
 0x648   :  { %v322_v52 = vpop.f32.mrb[2].mxu0 }
 0x649   :  { %v333_v53 = vadd.f32 %v322_v52, %v1229_v10  ;;  %v1002_v54 = vpop.f32.mrb[3].mxu0  ;;  %v326_v56 = vadd.f32 %v906_v55, %v322_v52 }
 0x64b   :  { %335 = vrot.lane.b32.xlu0 %v333_v53, %s1163_s22  ;;  %v908_v57 = vmul.f32 -1.442695, %v326_v56  ;;  %v918_v56 = vld [vmem:[%s1365_s0 + $0xa] sm:$0x3] }
 0x64d   :  { %1124 = vpow2.f32 %v908_v57 }
 0x657   :  { %v1125_v58 = vpop.eup %1124 }
 0x658   :  { %v330_v59 = vadd.f32 1.0, %v1125_v58 }
 0x65a   :  { %1126 = vrcp.f32 %v330_v59 }
 0x664   :  { %v1127_v60 = vpop.eup %1126 }
 0x665   :  { %v345_v3 = vsub.f32 1.0, %v1127_v60  ;;  %v351_v7 = vmul.f32 %v1127_v60, %v245_v50 }
 0x6bd   :  { %v336_v61 = vpop.permute.xlu0 %335 }
 0x6be   :  { %v338_v62 = vmul.f32 %v1127_v60, %v336_v61 }
 0x6c0   :  { %340 = vrot.lane.b32.xlu1 %v338_v62, %s1163_s22 }
 0x732   :  { %v341_v63 = vpop.permute.xlu1 %340 }
 0x733   :  { %v343_v1 = vadd.f32 %v906_v55, %v341_v63 }
 0x735   :  { %1128 = vtanh.f32 %v343_v1 }
 0x73f   :  { %v1129_v2 = vpop.eup %1128 }
 0x740   :  { %347 = vrot.lane.b32.xlu0 %v1129_v2, %s1165_s24 }
 0x7b2   :  { %v348_v6 = vpop.permute.xlu0 %347 }
 0x7b3   :  { %v350_v9 = vmul.f32 %v348_v6, %v345_v3 }
 0x7b5   :  { %v352_v11 = vadd.f32 %v351_v7, %v350_v9 }
 0x7b7   :  { %354 = vrot.lane.b32.xlu1 %v352_v11, %s1165_s24 }
 0x829   :  { %v355_v12 = vpop.permute.xlu1 %354 }
 0x82a   :  { %909 = vst.msk [vmem:[%s1366_s3 + $0x4] sm:$0x3] %vm18_vm0, %v355_v12  ;;  %1012 = vmatmul.mubr.msk.f32.vlgmr.msra.gmra.mrb[2].mxu1 %vm32_vm2, %v355_v12 }
 0x82b   :  { %1090 = vmatpush3.bf16.msra.mxu1 %v1200_v5  ;;  %1033 = vmatprep.mubr.msk.f32.mxu1 %vm1161_vm1, %v1162_v4 }
 0x82c   :  { %1091 = vmatprep.subr.bf16.mxu1 %v1160_v0 }
 0x82f   :  { %1093 = vmatpush3.bf16.msra.mxu1 %v1213_v8 }
 0x830   :  { %1100 = vmatprep.subr.bf16.mxu1 %v1160_v0 }
 0x8fd   :  { %v429_v13 = vpop.f32.mrb[2].mxu1 }
 0x8fe   :  { %v440_v14 = vadd.f32 %v429_v13, %v1229_v10  ;;  %v1013_v15 = vpop.f32.mrb[3].mxu1  ;;  %v433_v17 = vadd.f32 %v910_v16, %v429_v13  ;;  %v922_v13 = vld [vmem:[%s1365_s0 + $0xc] sm:$0x3] }
 0x900   :  { %442 = vrot.lane.b32.xlu0 %v440_v14, %s1163_s22  ;;  %v912_v18 = vmul.f32 -1.442695, %v433_v17 }
 0x902   :  { %1130 = vpow2.f32 %v912_v18 }
 0x90c   :  { %v1131_v19 = vpop.eup %1130 }
 0x90d   :  { %v437_v20 = vadd.f32 1.0, %v1131_v19 }
 0x90f   :  { %1132 = vrcp.f32 %v437_v20 }
 0x919   :  { %v1133_v21 = vpop.eup %1132 }
 0x91a   :  { %v452_v27 = vsub.f32 1.0, %v1133_v21  ;;  %v458_v29 = vmul.f32 %v1133_v21, %v352_v11 }
 0x972   :  { %v443_v22 = vpop.permute.xlu0 %442 }
 0x973   :  { %v445_v23 = vmul.f32 %v1133_v21, %v443_v22 }
 0x975   :  { %447 = vrot.lane.b32.xlu1 %v445_v23, %s1163_s22 }
 0x9e7   :  { %v448_v24 = vpop.permute.xlu1 %447 }
 0x9e8   :  { %v450_v25 = vadd.f32 %v910_v16, %v448_v24 }
 0x9ea   :  { %1134 = vtanh.f32 %v450_v25 }
 0x9f4   :  { %v1135_v26 = vpop.eup %1134 }
 0x9f5   :  { %454 = vrot.lane.b32.xlu0 %v1135_v26, %s1165_s24 }
 0xa67   :  { %v455_v28 = vpop.permute.xlu0 %454 }
 0xa68   :  { %v457_v30 = vmul.f32 %v455_v28, %v452_v27 }
 0xa6a   :  { %v459_v31 = vadd.f32 %v458_v29, %v457_v30 }
 0xa6c   :  { %461 = vrot.lane.b32.xlu1 %v459_v31, %s1165_s24 }
 0xade   :  { %v462_v32 = vpop.permute.xlu1 %461 }
 0xadf   :  { %913 = vst.msk [vmem:[%s1366_s3 + $0x6] sm:$0x3] %vm18_vm0, %v462_v32  ;;  %1023 = vmatmul.mubr.msk.f32.vlgmr.msra.gmra.mrb[4].mxu0 %vm32_vm2, %v462_v32 }
 0xae0   :  { %1096 = vmatpush3.bf16.msra.mxu0 %v1200_v5  ;;  %1044 = vmatprep.mubr.msk.f32.mxu0 %vm1161_vm1, %v1162_v4 }
 0xae1   :  { %1097 = vmatprep.subr.bf16.mxu0 %v1160_v0 }
 0xae4   :  { %1099 = vmatpush3.bf16.msra.mxu0 %v1213_v8 }
 0xbb2   :  { %v536_v33 = vpop.f32.mrb[4].mxu0 }
 0xbb3   :  { %v547_v34 = vadd.f32 %v536_v33, %v1229_v10  ;;  %v1024_v35 = vpop.f32.mrb[5].mxu0  ;;  %v540_v37 = vadd.f32 %v914_v36, %v536_v33  ;;  %v926_v33 = vld [vmem:[%s1365_s0 + $0xe] sm:$0x3] }
 0xbb5   :  { %549 = vrot.lane.b32.xlu0 %v547_v34, %s1163_s22  ;;  %v916_v38 = vmul.f32 -1.442695, %v540_v37 }
 0xbb7   :  { %1136 = vpow2.f32 %v916_v38 }
 0xbc1   :  { %v1137_v39 = vpop.eup %1136 }
 0xbc2   :  { %v544_v40 = vadd.f32 1.0, %v1137_v39 }
 0xbc4   :  { %1138 = vrcp.f32 %v544_v40 }
 0xbce   :  { %v1139_v41 = vpop.eup %1138 }
 0xbcf   :  { %v559_v47 = vsub.f32 1.0, %v1139_v41  ;;  %v565_v49 = vmul.f32 %v1139_v41, %v459_v31 }
 0xc27   :  { %v550_v42 = vpop.permute.xlu0 %549 }
 0xc28   :  { %v552_v43 = vmul.f32 %v1139_v41, %v550_v42 }
 0xc2a   :  { %554 = vrot.lane.b32.xlu1 %v552_v43, %s1163_s22 }
 0xc9c   :  { %v555_v44 = vpop.permute.xlu1 %554 }
 0xc9d   :  { %v557_v45 = vadd.f32 %v914_v36, %v555_v44 }
 0xc9f   :  { %1140 = vtanh.f32 %v557_v45 }
 0xca9   :  { %v1141_v46 = vpop.eup %1140 }
 0xcaa   :  { %561 = vrot.lane.b32.xlu0 %v1141_v46, %s1165_s24 }
 0xd1c   :  { %v562_v48 = vpop.permute.xlu0 %561 }
 0xd1d   :  { %v564_v50 = vmul.f32 %v562_v48, %v559_v47 }
 0xd1f   :  { %v566_v51 = vadd.f32 %v565_v49, %v564_v50 }
 0xd21   :  { %568 = vrot.lane.b32.xlu1 %v566_v51, %s1165_s24 }
 0xd93   :  { %v569_v52 = vpop.permute.xlu1 %568 }
 0xd94   :  { %917 = vst.msk [vmem:[%s1366_s3 + $0x8] sm:$0x3] %vm18_vm0, %v569_v52  ;;  %1034 = vmatmul.mubr.msk.f32.vlgmr.msra.gmra.mrb[4].mxu1 %vm32_vm2, %v569_v52 }
 0xd95   :  { %1102 = vmatpush3.bf16.msra.mxu1 %v1200_v5  ;;  %1055 = vmatprep.mubr.msk.f32.mxu1 %vm1161_vm1, %v1162_v4 }
 0xd96   :  { %1103 = vmatprep.subr.bf16.mxu1 %v1160_v0 }
 0xd99   :  { %1105 = vmatpush3.bf16.msra.mxu1 %v1213_v8 }
 0xe67   :  { %v643_v53 = vpop.f32.mrb[4].mxu1 }
 0xe68   :  { %v654_v54 = vadd.f32 %v643_v53, %v1229_v10  ;;  %v1035_v55 = vpop.f32.mrb[5].mxu1  ;;  %v647_v57 = vadd.f32 %v918_v56, %v643_v53 }
 0xe6a   :  { %656 = vrot.lane.b32.xlu0 %v654_v54, %s1163_s22  ;;  %v920_v58 = vmul.f32 -1.442695, %v647_v57 }
 0xe6c   :  { %1142 = vpow2.f32 %v920_v58 }
 0xe76   :  { %v1143_v5 = vpop.eup %1142 }
 0xe77   :  { %v651_v59 = vadd.f32 1.0, %v1143_v5 }
 0xe79   :  { %1144 = vrcp.f32 %v651_v59 }
 0xe83   :  { %v1145_v4 = vpop.eup %1144 }
 0xe84   :  { %v666_v63 = vsub.f32 1.0, %v1145_v4  ;;  %v672_v2 = vmul.f32 %v1145_v4, %v566_v51 }
 0xedc   :  { %v657_v0 = vpop.permute.xlu0 %656 }
 0xedd   :  { %v659_v60 = vmul.f32 %v1145_v4, %v657_v0 }
 0xedf   :  { %661 = vrot.lane.b32.xlu1 %v659_v60, %s1163_s22 }
 0xf51   :  { %v662_v8 = vpop.permute.xlu1 %661 }
 0xf52   :  { %v664_v61 = vadd.f32 %v918_v56, %v662_v8 }
 0xf54   :  { %1146 = vtanh.f32 %v664_v61 }
 0xf5e   :  { %v1147_v62 = vpop.eup %1146 }
 0xf5f   :  { %668 = vrot.lane.b32.xlu0 %v1147_v62, %s1165_s24 }
 0xfd1   :  { %v669_v1 = vpop.permute.xlu0 %668 }
 0xfd2   :  { %v671_v3 = vmul.f32 %v669_v1, %v666_v63 }
 0xfd4   :  { %v673_v6 = vadd.f32 %v672_v2, %v671_v3 }
 0xfd6   :  { %675 = vrot.lane.b32.xlu1 %v673_v6, %s1165_s24 }
0x1048   :  { %v676_v7 = vpop.permute.xlu1 %675 }
0x1049   :  { %921 = vst.msk [vmem:[%s1366_s3 + $0xa] sm:$0x3] %vm18_vm0, %v676_v7  ;;  %1045 = vmatmul.mubr.msk.f32.vlgmr.msra.gmra.mrb[6].mxu0 %vm32_vm2, %v676_v7 }
0x111c   :  { %v750_v9 = vpop.f32.mrb[6].mxu0 }
0x111d   :  { %v761_v11 = vadd.f32 %v750_v9, %v1229_v10  ;;  %v1046_v12 = vpop.f32.mrb[7].mxu0  ;;  %v754_v14 = vadd.f32 %v922_v13, %v750_v9 }
0x111f   :  { %763 = vrot.lane.b32.xlu0 %v761_v11, %s1163_s22  ;;  %v924_v15 = vmul.f32 -1.442695, %v754_v14 }
0x1121   :  { %1148 = vpow2.f32 %v924_v15 }
0x112b   :  { %v1149_v16 = vpop.eup %1148 }
0x112c   :  { %v758_v17 = vadd.f32 1.0, %v1149_v16 }
0x112e   :  { %1150 = vrcp.f32 %v758_v17 }
0x1138   :  { %v1151_v18 = vpop.eup %1150 }
0x1139   :  { %v773_v24 = vsub.f32 1.0, %v1151_v18  ;;  %v779_v26 = vmul.f32 %v1151_v18, %v673_v6 }
0x1191   :  { %v764_v19 = vpop.permute.xlu0 %763 }
0x1192   :  { %v766_v20 = vmul.f32 %v1151_v18, %v764_v19 }
0x1194   :  { %768 = vrot.lane.b32.xlu1 %v766_v20, %s1163_s22 }
0x1206   :  { %v769_v21 = vpop.permute.xlu1 %768 }
0x1207   :  { %v771_v22 = vadd.f32 %v922_v13, %v769_v21 }
0x1209   :  { %1152 = vtanh.f32 %v771_v22 }
0x1213   :  { %v1153_v23 = vpop.eup %1152 }
0x1214   :  { %775 = vrot.lane.b32.xlu0 %v1153_v23, %s1165_s24 }
0x1286   :  { %v776_v25 = vpop.permute.xlu0 %775 }
0x1287   :  { %v778_v27 = vmul.f32 %v776_v25, %v773_v24 }
0x1289   :  { %v780_v28 = vadd.f32 %v779_v26, %v778_v27 }
0x128b   :  { %782 = vrot.lane.b32.xlu1 %v780_v28, %s1165_s24 }
0x12fd   :  { %v783_v29 = vpop.permute.xlu1 %782 }
0x12fe   :  { %925 = vst.msk [vmem:[%s1366_s3 + $0xc] sm:$0x3] %vm18_vm0, %v783_v29  ;;  %1056 = vmatmul.mubr.msk.f32.vlgmr.msra.gmra.mrb[6].mxu1 %vm32_vm2, %v783_v29 }
0x13d1   :  { %v857_v30 = vpop.f32.mrb[6].mxu1 }
0x13d2   :  { %v868_v31 = vadd.f32 %v857_v30, %v1229_v10  ;;  %v1057_v32 = vpop.f32.mrb[7].mxu1  ;;  %v861_v34 = vadd.f32 %v926_v33, %v857_v30 }
0x13d4   :  { %870 = vrot.lane.b32.xlu0 %v868_v31, %s1163_s22  ;;  %v928_v35 = vmul.f32 -1.442695, %v861_v34 }
0x13d6   :  { %1154 = vpow2.f32 %v928_v35 }
0x13e0   :  { %v1155_v36 = vpop.eup %1154 }
0x13e1   :  { %v865_v37 = vadd.f32 1.0, %v1155_v36 }
0x13e3   :  { %1156 = vrcp.f32 %v865_v37 }
0x13ed   :  { %v1157_v38 = vpop.eup %1156 }
0x13ee   :  { %v880_v43 = vsub.f32 1.0, %v1157_v38  ;;  %v886_v45 = vmul.f32 %v1157_v38, %v780_v28 }
0x1446   :  { %v871_v39 = vpop.permute.xlu0 %870 }
0x1447   :  { %v873_v40 = vmul.f32 %v1157_v38, %v871_v39 }
0x1449   :  { %875 = vrot.lane.b32.xlu1 %v873_v40, %s1163_s22 }
0x14bb   :  { %v876_v41 = vpop.permute.xlu1 %875 }
0x14bc   :  { %v878_v10 = vadd.f32 %v926_v33, %v876_v41 }
0x14be   :  { %1158 = vtanh.f32 %v878_v10 }
0x14c8   :  { %v1159_v42 = vpop.eup %1158 }
0x14c9   :  { %882 = vrot.lane.b32.xlu0 %v1159_v42, %s1165_s24 }
0x153b   :  { %v883_v44 = vpop.permute.xlu0 %882 }
0x153c   :  { %v885_v46 = vmul.f32 %v883_v44, %v880_v43 }
0x153e   :  { %v887_v47 = vadd.f32 %v886_v45, %v885_v46 }
0x1540   :  { %889 = vrot.lane.b32.xlu1 %v887_v47, %s1165_s24 }
0x15b2   :  { %v890_v48 = vpop.permute.xlu1 %889 }
0x15b3   :  { %929 = vst.msk [vmem:[%s1366_s3 + $0xe] sm:$0x3] %vm18_vm0, %v890_v48  ;;  %894 = vst.msk [vmem:[#allocation2] sm:$0x3] %vm18_vm0, %v890_v48 }

</bundles_post_ra>
